<compile_context>
chip_gen: v7x
topology: tpu7x:2x2x1
jax: 0.10.0
libtpu: 0.0.40
codegen_flags: <defaults>
</compile_context>

<pallas_src>
import jax
import jax.numpy as jnp
from jax.experimental import pallas as pl
from jax.experimental.pallas import tpu as pltpu


def _round_up(n, m):
    return ((n + m - 1) // m) * m


def _classifier_kernel(x_ref, w_ref, b_ref, o_ref):
    """One batch tile of out.T = W @ x.T + b.

    x_ref: [TB, H]  VMEM  batch tile of activations (H on lanes)
    w_ref: [Cp, H]  VMEM  weight in PyTorch layout, classes padded to 8
    b_ref: [Cp]     SMEM  per-class bias scalars
    o_ref: [Cp, TB] VMEM  transposed logits: batch on the lane axis
    """
    x = x_ref[...]
    w = w_ref[...]
    # Contract over hidden: (Cp, H) . (TB, H) -> (Cp, TB).  Batch lands on the
    # lane axis (lane-dense result/store); accumulation is f32.
    acc = jax.lax.dot_general(
        w, x,
        dimension_numbers=(((1,), (1,)), ((), ())),
        preferred_element_type=jnp.float32,
    )
    # Per-class bias scalars from SMEM, broadcast across the lane (batch) axis.
    for c in range(o_ref.shape[0]):  # static unroll, Cp == 8
        o_ref[c:c + 1, :] = (acc[c:c + 1, :] + b_ref[c]).astype(o_ref.dtype)


def bert_classifier_forward(x, weight, bias, *, batch_tile=1024):
    """BertClassifier forward.

    x: [B, H] activations; weight: [C, H] (PyTorch nn.Linear layout);
    bias: [C].  Returns [B, C] logits == x @ weight.T + bias.
    """
    B, H = x.shape
    C, _ = weight.shape
    out_dtype = x.dtype

    # Classes padded to one sublane tile so every block is (8, 128)-aligned.
    c_pad = _round_up(C, 8)
    # Batch tile: multiple of 128 (it becomes the lane axis of the output),
    # capped so 2 x TB x H x 4B double-buffered activations fit v7x VMEM.
    tb = min(_round_up(batch_tile, 128), _round_up(B, 128))
    b_pad = _round_up(B, tb)

    x_p = jnp.pad(x, ((0, b_pad - B), (0, 0))) if b_pad != B else x
    w_p = jnp.pad(weight, ((0, c_pad - C), (0, 0))) if c_pad != C else weight
    b_p = jnp.pad(bias, (0, c_pad - C)) if c_pad != C else bias

    grid = (b_pad // tb,)

    out_t = pl.pallas_call(
        _classifier_kernel,
        out_shape=jax.ShapeDtypeStruct((c_pad, b_pad), out_dtype),
        grid_spec=pltpu.PrefetchScalarGridSpec(
            num_scalar_prefetch=0,
            grid=grid,
            in_specs=[
                # Batch-tiled activations: double-buffered so the x DMA (the
                # actual bottleneck) overlaps compute.
                pl.BlockSpec((tb, H), lambda i: (i, 0)),
                # Weight kept in [classes, hidden] layout (hidden on lanes).
                pl.BlockSpec((c_pad, H), lambda i: (0, 0)),
                # Bias scalars in SMEM instead of a lane-padded VMEM tile.
                pl.BlockSpec(memory_space=pltpu.MemorySpace.SMEM),
            ],
            # Transposed, lane-dense output block: batch on the lane axis.
            out_specs=pl.BlockSpec((c_pad, tb), lambda i: (0, i)),
        ),
        compiler_params=pltpu.CompilerParams(
            # Independent batch tiles -> megacore sharding on v7x; harmless
            # on single-TC v5e/v6e.
            dimension_semantics=("parallel",),
        ),
    )(x_p, w_p, b_p)

    # Back to PyTorch's [B, C], dropping batch/class padding.
    return out_t.T[:B, :C]


if __name__ == "__main__":
    key = jax.random.PRNGKey(0)
    k_x, k_w, k_b = jax.random.split(key, 3)

    batch, hidden = 8, 32

    # Inputs (e.g. pooled BERT [CLS] features).
    x = jax.random.normal(k_x, (batch, hidden), dtype=jnp.float32)

    # init_bert_weights: Linear.weight ~ N(0, 0.02), bias = 0.
    weight = 0.02 * jax.random.normal(k_w, (2, hidden), dtype=jnp.float32)
    bias = jnp.zeros((2,), dtype=jnp.float32)

    out = jax.block_until_ready(bert_classifier_forward(x, weight, bias))
    ref = x @ weight.T + bias
    assert out.shape == (batch, 2)
    assert jnp.allclose(out, ref, atol=1e-5, rtol=1e-5)

    # Also exercise the SMEM bias path with a non-zero bias.
    bias2 = jax.random.normal(k_b, (2,), dtype=jnp.float32)
    out2 = jax.block_until_ready(bert_classifier_forward(x, weight, bias2))
    ref2 = x @ weight.T + bias2
    assert jnp.allclose(out2, ref2, atol=1e-5, rtol=1e-5)

    print("KERNEL_OK")
</pallas_src>

<mosaic_0001>
module attributes {stable_mosaic.version = 11 : i64} {
  func.func @_classifier_kernel(%arg0: i32, %arg1: memref<128x32xf32, #tpu.memory_space<vmem>>, %arg2: memref<8x32xf32, #tpu.memory_space<vmem>>, %arg3: memref<8xf32, #tpu.memory_space<smem>>, %arg4: memref<8x128xf32, #tpu.memory_space<vmem>>) attributes {dimension_semantics = [#tpu.dimension_semantics<parallel>], iteration_bounds = array<i64: 1>, scalar_prefetch = 0 : i64, scratch_operands = 0 : i64, tpu.core_type = #tpu.core_type<tc>, window_params = [{transform_indices = @transform_0, window_bounds = array<i64: 128, 32>}, {pipeline_mode = #tpu.pipeline_mode<synchronous>, transform_indices = @transform_1, window_bounds = array<i64: 8, 32>}, {transform_indices = @transform_2, window_bounds = array<i64: 8>}, {transform_indices = @transform_3, window_bounds = array<i64: 8, 128>}]} {
    %c0 = arith.constant 0 : index
    %c0_0 = arith.constant 0 : index
    %0 = vector.load %arg1[%c0, %c0_0] : memref<128x32xf32, #tpu.memory_space<vmem>>, vector<128x32xf32>
    %c0_1 = arith.constant 0 : index
    %c0_2 = arith.constant 0 : index
    %1 = vector.load %arg2[%c0_1, %c0_2] : memref<8x32xf32, #tpu.memory_space<vmem>>, vector<8x32xf32>
    %cst = arith.constant dense<0.000000e+00> : vector<8x128xf32>
    %2 = tpu.matmul %1, %0, %cst {dimension_numbers = #tpu.dot_dimension_numbers<[1], [1], [0], [0], [0, 0, 1, 0], [], []>} : vector<8x32xf32>, vector<128x32xf32>, vector<8x128xf32> -> vector<8x128xf32>
    %3 = vector.extract_strided_slice %2 {offsets = [0, 0], sizes = [1, 128], strides = [1, 1]} : vector<8x128xf32> to vector<1x128xf32>
    %c0_3 = arith.constant 0 : index
    %4 = memref.load %arg3[%c0_3] : memref<8xf32, #tpu.memory_space<smem>>
    %5 = vector.broadcast %4 : f32 to vector<1x128xf32>
    %6 = arith.addf %3, %5 : vector<1x128xf32>
    %c0_4 = arith.constant 0 : index
    %c0_5 = arith.constant 0 : index
    %7 = vector.load %arg4[%c0_4, %c0_5] : memref<8x128xf32, #tpu.memory_space<vmem>>, vector<1x128xf32>
    tpu.vector_store %arg4[%c0_4, %c0_5], %6 {strides = array<i32>} : memref<8x128xf32, #tpu.memory_space<vmem>>, vector<1x128xf32>,
    %8 = vector.extract_strided_slice %2 {offsets = [1, 0], sizes = [1, 128], strides = [1, 1]} : vector<8x128xf32> to vector<1x128xf32>
    %c1 = arith.constant 1 : index
    %9 = memref.load %arg3[%c1] : memref<8xf32, #tpu.memory_space<smem>>
    %10 = vector.broadcast %9 : f32 to vector<1x128xf32>
    %11 = arith.addf %8, %10 : vector<1x128xf32>
    %c1_6 = arith.constant 1 : index
    %c0_7 = arith.constant 0 : index
    %12 = vector.load %arg4[%c1_6, %c0_7] : memref<8x128xf32, #tpu.memory_space<vmem>>, vector<1x128xf32>
    tpu.vector_store %arg4[%c1_6, %c0_7], %11 {strides = array<i32>} : memref<8x128xf32, #tpu.memory_space<vmem>>, vector<1x128xf32>,
    %13 = vector.extract_strided_slice %2 {offsets = [2, 0], sizes = [1, 128], strides = [1, 1]} : vector<8x128xf32> to vector<1x128xf32>
    %c2 = arith.constant 2 : index
    %14 = memref.load %arg3[%c2] : memref<8xf32, #tpu.memory_space<smem>>
    %15 = vector.broadcast %14 : f32 to vector<1x128xf32>
    %16 = arith.addf %13, %15 : vector<1x128xf32>
    %c2_8 = arith.constant 2 : index
    %c0_9 = arith.constant 0 : index
    %17 = vector.load %arg4[%c2_8, %c0_9] : memref<8x128xf32, #tpu.memory_space<vmem>>, vector<1x128xf32>
    tpu.vector_store %arg4[%c2_8, %c0_9], %16 {strides = array<i32>} : memref<8x128xf32, #tpu.memory_space<vmem>>, vector<1x128xf32>,
    %18 = vector.extract_strided_slice %2 {offsets = [3, 0], sizes = [1, 128], strides = [1, 1]} : vector<8x128xf32> to vector<1x128xf32>
    %c3 = arith.constant 3 : index
    %19 = memref.load %arg3[%c3] : memref<8xf32, #tpu.memory_space<smem>>
    %20 = vector.broadcast %19 : f32 to vector<1x128xf32>
    %21 = arith.addf %18, %20 : vector<1x128xf32>
    %c3_10 = arith.constant 3 : index
    %c0_11 = arith.constant 0 : index
    %22 = vector.load %arg4[%c3_10, %c0_11] : memref<8x128xf32, #tpu.memory_space<vmem>>, vector<1x128xf32>
    tpu.vector_store %arg4[%c3_10, %c0_11], %21 {strides = array<i32>} : memref<8x128xf32, #tpu.memory_space<vmem>>, vector<1x128xf32>,
    %23 = vector.extract_strided_slice %2 {offsets = [4, 0], sizes = [1, 128], strides = [1, 1]} : vector<8x128xf32> to vector<1x128xf32>
    %c4 = arith.constant 4 : index
    %24 = memref.load %arg3[%c4] : memref<8xf32, #tpu.memory_space<smem>>
    %25 = vector.broadcast %24 : f32 to vector<1x128xf32>
    %26 = arith.addf %23, %25 : vector<1x128xf32>
    %c4_12 = arith.constant 4 : index
    %c0_13 = arith.constant 0 : index
    %27 = vector.load %arg4[%c4_12, %c0_13] : memref<8x128xf32, #tpu.memory_space<vmem>>, vector<1x128xf32>
    tpu.vector_store %arg4[%c4_12, %c0_13], %26 {strides = array<i32>} : memref<8x128xf32, #tpu.memory_space<vmem>>, vector<1x128xf32>,
    %28 = vector.extract_strided_slice %2 {offsets = [5, 0], sizes = [1, 128], strides = [1, 1]} : vector<8x128xf32> to vector<1x128xf32>
    %c5 = arith.constant 5 : index
    %29 = memref.load %arg3[%c5] : memref<8xf32, #tpu.memory_space<smem>>
    %30 = vector.broadcast %29 : f32 to vector<1x128xf32>
    %31 = arith.addf %28, %30 : vector<1x128xf32>
    %c5_14 = arith.constant 5 : index
    %c0_15 = arith.constant 0 : index
    %32 = vector.load %arg4[%c5_14, %c0_15] : memref<8x128xf32, #tpu.memory_space<vmem>>, vector<1x128xf32>
    tpu.vector_store %arg4[%c5_14, %c0_15], %31 {strides = array<i32>} : memref<8x128xf32, #tpu.memory_space<vmem>>, vector<1x128xf32>,
    %33 = vector.extract_strided_slice %2 {offsets = [6, 0], sizes = [1, 128], strides = [1, 1]} : vector<8x128xf32> to vector<1x128xf32>
    %c6 = arith.constant 6 : index
    %34 = memref.load %arg3[%c6] : memref<8xf32, #tpu.memory_space<smem>>
    %35 = vector.broadcast %34 : f32 to vector<1x128xf32>
    %36 = arith.addf %33, %35 : vector<1x128xf32>
    %c6_16 = arith.constant 6 : index
    %c0_17 = arith.constant 0 : index
    %37 = vector.load %arg4[%c6_16, %c0_17] : memref<8x128xf32, #tpu.memory_space<vmem>>, vector<1x128xf32>
    tpu.vector_store %arg4[%c6_16, %c0_17], %36 {strides = array<i32>} : memref<8x128xf32, #tpu.memory_space<vmem>>, vector<1x128xf32>,
    %38 = vector.extract_strided_slice %2 {offsets = [7, 0], sizes = [1, 128], strides = [1, 1]} : vector<8x128xf32> to vector<1x128xf32>
    %c7 = arith.constant 7 : index
    %39 = memref.load %arg3[%c7] : memref<8xf32, #tpu.memory_space<smem>>
    %40 = vector.broadcast %39 : f32 to vector<1x128xf32>
    %41 = arith.addf %38, %40 : vector<1x128xf32>
    %c7_18 = arith.constant 7 : index
    %c0_19 = arith.constant 0 : index
    %42 = vector.load %arg4[%c7_18, %c0_19] : memref<8x128xf32, #tpu.memory_space<vmem>>, vector<1x128xf32>
    tpu.vector_store %arg4[%c7_18, %c0_19], %41 {strides = array<i32>} : memref<8x128xf32, #tpu.memory_space<vmem>>, vector<1x128xf32>,
    return
  }
  func.func @transform_0(%arg0: i32) -> (i32, i32) {
    %c0_i32 = arith.constant 0 : i32
    %c0_i32_0 = arith.constant 0 : i32
    return %arg0, %c0_i32 : i32, i32
  }
  func.func @transform_1(%arg0: i32) -> (i32, i32) {
    %c0_i32 = arith.constant 0 : i32
    %c0_i32_0 = arith.constant 0 : i32
    %c0_i32_1 = arith.constant 0 : i32
    return %c0_i32, %c0_i32_0 : i32, i32
  }
  func.func @transform_2(%arg0: i32) -> i32 {
    %c0_i32 = arith.constant 0 : i32
    %c0_i32_0 = arith.constant 0 : i32
    return %c0_i32 : i32
  }
  func.func @transform_3(%arg0: i32) -> (i32, i32) {
    %c0_i32 = arith.constant 0 : i32
    %c0_i32_0 = arith.constant 0 : i32
    return %c0_i32, %arg0 : i32, i32
  }
}

</mosaic_0001>

<bundles_post_ra>
// kernel: tpu_custom_call.1
= control target key start
LH: loop header
LB: loop body
LE: loop exit
PB: predicated region body
PF: predicated region fallthrough
CT: control target
= control target key end

     0   :  { %8 = vsyncpa [#allocation4], 0  ;;  %s479_s0 = inlined_call_operand.vmem [shape: f32[128,32], index: 0, kind: input, shape index: {}]   ;;  %s480_s1 = inlined_call_operand.vmem [shape: f32[8,32], index: 1, kind: input, shape index: {}]   ;;  %s481_s2 = inlined_call_operand.vmem [shape: f32[8], index: 2, kind: input, shape index: {}]   ;;  %s482_s3 = inlined_call_operand.hbm [shape: f32[8,128], index: 3, kind: output, shape index: {}]  }
   0x1   :  { %9 = vsyncpa [#allocation3], 0  ;;  %s20_s14 = sshll.u32 %s481_s2, 4  ;;  %s21_s14 = int_to_ptr.vmem [resolvable:$true] %s20_s14 }
   0x2   :  { %s327_s15 = scalar_lea.vmem %s21_s14, 16  ;;  %p332_p1 = scmp.lt.s32.totalorder %s21_s14, %s21_s14 }
   0x3   :  { %p328_p0 = scmp.ne.s32.totalorder %s21_s14, %s327_s15  ;;  %p333_p2 = scmp.lt.s32.totalorder %s327_s15, %s327_s15 }
   0x5   :  { %p334_p3 = por %p333_p2, %p332_p1 }
   0x7   :  { %p335_p4 = pnand %p334_p3, %p328_p0 }
   0x9   :  { %338 = shalt.err (!%p335_p4)
}
   0xa   :  { %s365_s16 = smov [#allocation2]  }
   0xb   :  { %23 = dma.vmem_to_smem %s21_s14, 16, %s365_s16, [#allocation4]  }
   0xc   :  { %361 = dma.done.wait [#allocation4], 16  }
   0xd   :  { %362 = vsyncadd [#allocation4], 4294967280 }
   0xe   :  { %27 = sfence }
   0xf   :  { %v28_v0 = vld [vmem:[%s479_s0] sm:$0xff]  ;;  %v29_v1 = vld [vmem:[%s479_s0 + $0x8] sm:$0xff]  ;;  %vm45_vm0 = vcmask 261120   ;;  %v366_v2 = vmov 0.0|0.0   ;;  %vm367_vm2 = vmmov 0   ;;  %v368_v5 = vmov 0.0  }
  0x10   :  { %290 = vmatprep.subr.bf16.mxu0 %v366_v2  ;;  %v291_v3 = vpack.c.bf16 %v29_v1, %v28_v0  ;;  %vm401_vm1 = vmpackc.low %vm45_vm0, %vm45_vm0  ;;  %287 = vmatprep.mubr.msk.f32.mxu0 %vm367_vm2, %v368_v5  ;;  %v30_v6 = vld [vmem:[%s479_s0 + $0x10] sm:$0xff]  ;;  %v31_v7 = vld [vmem:[%s479_s0 + $0x18] sm:$0xff]  ;;  %s167_s22 = sld [smem:[#allocation2]]  ;;  %s231_s23 = sld [smem:[#allocation2 + $0x1]] }
  0x11   :  { %v295_v8 = vpack.c.bf16 %v31_v7, %v30_v6  ;;  %v32_v9 = vld [vmem:[%s479_s0 + $0x20] sm:$0xff]  ;;  %v33_v10 = vld [vmem:[%s479_s0 + $0x28] sm:$0xff]  ;;  %v34_v12 = vld [vmem:[%s479_s0 + $0x30] sm:$0xff]  ;;  %s232_s24 = sld [smem:[#allocation2 + $0x2]]  ;;  %s233_s25 = sld [smem:[#allocation2 + $0x3]] }
  0x12   :  { %293 = vmatpush3.bf16.xpose.msk.msra.mxu0 %vm401_vm1, %v291_v3  ;;  %v299_v11 = vpack.c.bf16 %v33_v10, %v32_v9  ;;  %v35_v13 = vld [vmem:[%s479_s0 + $0x38] sm:$0xff]  ;;  %v36_v15 = vld [vmem:[%s479_s0 + $0x40] sm:$0xff]  ;;  %v37_v16 = vld [vmem:[%s479_s0 + $0x48] sm:$0xff]  ;;  %s234_s26 = sld [smem:[#allocation2 + $0x4]]  ;;  %s235_s27 = sld [smem:[#allocation2 + $0x5]] }
  0x13   :  { %294 = vmatprep.subr.bf16.mxu0 %v366_v2  ;;  %v303_v14 = vpack.c.bf16 %v35_v13, %v34_v12  ;;  %v307_v17 = vpack.c.bf16 %v37_v16, %v36_v15  ;;  %v38_v18 = vld [vmem:[%s479_s0 + $0x50] sm:$0xff]  ;;  %v39_v19 = vld [vmem:[%s479_s0 + $0x58] sm:$0xff]  ;;  %v40_v21 = vld [vmem:[%s479_s0 + $0x60] sm:$0xff]  ;;  %s236_s28 = sld [smem:[#allocation2 + $0x6]]  ;;  %s237_s29 = sld [smem:[#allocation2 + $0x7]] }
  0x14   :  { %v311_v20 = vpack.c.bf16 %v39_v19, %v38_v18  ;;  %v41_v22 = vld [vmem:[%s479_s0 + $0x68] sm:$0xff]  ;;  %v42_v24 = vld [vmem:[%s479_s0 + $0x70] sm:$0xff]  ;;  %v43_v25 = vld [vmem:[%s479_s0 + $0x78] sm:$0xff]  ;;  %s369_s0 = smov [#allocation5]  }
  0x15   :  { %v315_v23 = vpack.c.bf16 %v41_v22, %v40_v21  ;;  %v319_v26 = vpack.c.bf16 %v43_v25, %v42_v24  ;;  %v44_v27 = vld [vmem:[%s480_s1] sm:$0xff]  ;;  %s205_s1 = sshll.u32 %s369_s0, 4  ;;  %s206_s1 = int_to_ptr.vmem [resolvable:$true] %s205_s1 }
  0x16   :  { %v168_v28 = vstv %s167_s22  ;;  %v172_v29 = vstv %s231_s23  ;;  %s339_s30 = scalar_lea.vmem %s206_s1, 128  ;;  %p344_p6 = scmp.lt.s32.totalorder %s206_s1, %s206_s1 }
  0x17   :  { %v176_v30 = vstv %s232_s24  ;;  %v180_v31 = vstv %s233_s25  ;;  %p340_p5 = scmp.ne.s32.totalorder %s206_s1, %s339_s30  ;;  %p345_p7 = scmp.lt.s32.totalorder %s339_s30, %s339_s30 }
  0x18   :  { %v184_v32 = vstv %s234_s26  ;;  %v188_v33 = vstv %s235_s27 }
  0x19   :  { %v192_v34 = vstv %s236_s28  ;;  %v196_v35 = vstv %s237_s29  ;;  %p346_p8 = por %p345_p7, %p344_p6 }
  0x1a   :  { %297 = vmatpush3.bf16.xpose.msk.msra.mxu0 %vm401_vm1, %v295_v8 }
  0x1b   :  { %298 = vmatprep.subr.bf16.mxu0 %v366_v2  ;;  %p347_p9 = pnand %p346_p8, %p340_p5 }
  0x22   :  { %301 = vmatpush3.bf16.xpose.msk.msra.mxu0 %vm401_vm1, %v299_v11 }
  0x23   :  { %302 = vmatprep.subr.bf16.mxu0 %v366_v2 }
  0x2a   :  { %305 = vmatpush3.bf16.xpose.msk.msra.mxu0 %vm401_vm1, %v303_v14 }
  0x2b   :  { %306 = vmatprep.subr.bf16.mxu0 %v366_v2 }
  0x32   :  { %309 = vmatpush3.bf16.xpose.msk.msra.mxu0 %vm401_vm1, %v307_v17 }
  0x33   :  { %310 = vmatprep.subr.bf16.mxu0 %v366_v2 }
  0x3a   :  { %313 = vmatpush3.bf16.xpose.msk.msra.mxu0 %vm401_vm1, %v311_v20 }
  0x3b   :  { %314 = vmatprep.subr.bf16.mxu0 %v366_v2 }
  0x42   :  { %317 = vmatpush3.bf16.xpose.msk.msra.mxu0 %vm401_vm1, %v315_v23 }
  0x43   :  { %318 = vmatprep.subr.bf16.mxu0 %v366_v2 }
  0x4a   :  { %321 = vmatpush3.bf16.xpose.msk.msra.mxu0 %vm401_vm1, %v319_v26 }
  0x51   :  { %288 = vmatmul.mubr.msk.f32.vlgmr.msra.gmra.mrb[0].mxu0 %vm45_vm0, %v44_v27 }
 0x124   :  { %v163_v36 = vpop.f32.mrb[0].mxu0 }
 0x125   :  { %v169_v37 = vadd.f32 %v168_v28, %v163_v36  ;;  %v173_v38 = vadd.f32 %v172_v29, %v163_v36  ;;  %v177_v39 = vadd.f32 %v176_v30, %v163_v36  ;;  %v181_v40 = vadd.f32 %v180_v31, %v163_v36  ;;  %v289_v41 = vpop.f32.mrb[1].mxu0 }
 0x126   :  { %v185_v42 = vadd.f32 %v184_v32, %v163_v36  ;;  %v189_v43 = vadd.f32 %v188_v33, %v163_v36  ;;  %v193_v44 = vadd.f32 %v192_v34, %v163_v36  ;;  %v197_v45 = vadd.f32 %v196_v35, %v163_v36 }
 0x127   :  { %170 = vst [vmem:[#allocation5] sm:$0x1] %v169_v37  ;;  %174 = vst [vmem:[#allocation5] sm:$0x2] %v173_v38 }
 0x128   :  { %178 = vst [vmem:[#allocation5] sm:$0x4] %v177_v39  ;;  %182 = vst [vmem:[#allocation5] sm:$0x8] %v181_v40 }
 0x129   :  { %186 = vst [vmem:[#allocation5] sm:$0x10] %v185_v42  ;;  %190 = vst [vmem:[#allocation5] sm:$0x20] %v189_v43 }
 0x12a   :  { %194 = vst [vmem:[#allocation5] sm:$0x40] %v193_v44  ;;  %198 = vst [vmem:[#allocation5] sm:$0x80] %v197_v45 }
 0x12b   :  { %350 = shalt.err (!%p347_p9)
}
 0x12c   :  { %s351_s6 = scalar_lea.hbm %s482_s3, 128 }
 0x12d   :  { %p352_p10 = scmp.ne.s32.totalorder %s482_s3, %s351_s6  ;;  %p355_p11 = scmp.lt.u32.totalorder %s351_s6, %s482_s3 }
 0x12f   :  { %p357_p12 = pnand %p355_p11, %p352_p10 }
 0x131   :  { %360 = shalt.err (!%p357_p12)
}
 0x132   :  { %208 = dma.vmem_to_hbm [thread:$0]  %s206_s1, 128, %s482_s3, [#allocation3]  }
 0x133   :  { %363 = dma.done.wait [#allocation3], 128  }
 0x134   :  { %364 = vsyncadd [#allocation3], 4294967168 }
 0x135   :  { %212 = vsyncpa [#allocation3], 1 }
 0x136   :  { %213 = vsyncpa [#allocation4], 1 }

</bundles_post_ra>
